<compile_context>
chip_gen: v7x
topology: tpu7x:2x2x1
jax: 0.10.0
libtpu: 0.0.40
codegen_flags: <defaults>
</compile_context>

<pallas_src>
import math

import jax
import jax.numpy as jnp
from jax.experimental import pallas as pl
from jax.experimental.pallas import tpu as pltpu

_LANE = 128
_SUBLANE = 8


def _round_up(x, m):
    return (x + m - 1) // m * m


def _vmem_budget_bytes():
    """~70% of this chip's per-core VMEM (fallback: 64 MiB, fits every gen)."""
    cap = 64 * 1024 * 1024
    try:
        cap = int(pltpu.get_tpu_info().vmem_capacity_bytes)
    except Exception:
        pass
    return int(cap * 0.70)


def _lora_kernel(x_ref, wdt_ref, wut_ref, o_ref):
    # x_ref  : [TM, in_f]     original dtype (cast on the VPU, hidden under DMA)
    # wdt_ref: [in_f, r_p]    pre-transposed lora_down weight (VMEM-resident)
    # wut_ref: [r_p, TN]      pre-transposed, pre-scaled lora_up weight
    # o_ref  : [TM, TN]
    x = x_ref[...].astype(wdt_ref.dtype)
    h = jnp.dot(x, wdt_ref[...], preferred_element_type=jnp.float32)
    # dropout (eval mode) == identity; scaling already folded into wut_ref
    h = h.astype(wut_ref.dtype)
    y = jnp.dot(h, wut_ref[...], preferred_element_type=jnp.float32)
    o_ref[...] = y.astype(o_ref.dtype)


def lora_forward(x, w_down, w_up, *, alpha, r,
                 compute_dtype=None, out_dtype=None,
                 block_m=None, block_n=None):
    """LoRA path: lora_up(dropout(lora_down(x))) * alpha/r (eval-mode dropout).

    x      : [..., in_features]
    w_down : [r, in_features]      (PyTorch nn.Linear convention)
    w_up   : [out_features, r]
    """
    scaling = alpha / r
    in_features = x.shape[-1]
    out_features = w_up.shape[0]
    assert w_down.shape == (r, in_features)
    assert w_up.shape == (out_features, r)
    if compute_dtype is None:
        compute_dtype = x.dtype
    if out_dtype is None:
        out_dtype = x.dtype

    lead_shape = x.shape[:-1]
    x2d = x.reshape(-1, in_features)          # metadata-only, no copy
    M = x2d.shape[0]

    # Rank padded to a full lane: dense vregs for h, clean bf16 packing of wu_t.
    r_p = _round_up(r, _LANE)

    # One-time weight relayout (tiny, stays resident in VMEM):
    # transpose, pad rank to r_p, fold `scaling` into wu_t in f32 before casting.
    wd_t = jnp.zeros((in_features, r_p), compute_dtype).at[:, :r].set(
        w_down.T.astype(compute_dtype))
    wu_t = jnp.zeros((r_p, out_features), compute_dtype).at[:r, :].set(
        (w_up.T.astype(jnp.float32) * scaling).astype(compute_dtype))

    x_isz = jnp.dtype(x.dtype).itemsize
    c_isz = jnp.dtype(compute_dtype).itemsize
    o_isz = jnp.dtype(out_dtype).itemsize

    vmem_target = _vmem_budget_bytes()

    # --- output-column tile: lane-dense 128-multiple, or full dim if unaligned ---
    if block_n is None:
        if out_features % _LANE == 0:
            block_n = min(out_features, 2048)
        else:
            block_n = out_features          # full-dim block (allowed by Mosaic)

    # --- row tile: sized from the VMEM budget (shrinks on v7x, grows on v5e/v6e) ---
    if block_m is None:
        weight_bytes = 2 * (in_features * r_p + r_p * block_n) * c_isz   # double-buffered
        per_row = 2 * (in_features * x_isz + block_n * o_isz)            # x + out tiles
        avail = max(vmem_target - weight_bytes - (2 << 20), per_row * _SUBLANE)
        block_m = int(min(512, avail // per_row))
        if M >= 2 * _SUBLANE:
            # Guarantee >= 2 row steps: feeds both v7x TensorCores, enables pipelining.
            block_m = min(block_m, _round_up(pl.cdiv(M, 2), _SUBLANE))
    block_m = max(_SUBLANE, (block_m // _SUBLANE) * _SUBLANE)
    block_m = min(block_m, _round_up(M, _SUBLANE))

    m_tiles = pl.cdiv(M, block_m)
    n_tiles = pl.cdiv(out_features, block_n)

    est_vmem = (2 * block_m * (in_features * x_isz + block_n * o_isz)
                + 2 * (in_features * r_p + r_p * block_n) * c_isz
                + (2 << 20))
    vmem_limit = int(min(max(est_vmem, 32 * 1024 * 1024), vmem_target + (8 << 20)))

    out2d = pl.pallas_call(
        _lora_kernel,
        out_shape=jax.ShapeDtypeStruct((M, out_features), out_dtype),
        grid_spec=pltpu.PrefetchScalarGridSpec(
            num_scalar_prefetch=0,
            grid=(m_tiles, n_tiles),
            in_specs=[
                pl.BlockSpec((block_m, in_features), lambda i, j: (i, 0)),
                pl.BlockSpec((in_features, r_p), lambda i, j: (0, 0)),   # VMEM-resident
                pl.BlockSpec((r_p, block_n), lambda i, j: (0, j)),
            ],
            out_specs=pl.BlockSpec((block_m, block_n), lambda i, j: (i, j)),
        ),
        compiler_params=pltpu.CompilerParams(
            dimension_semantics=("parallel", "parallel"),
            vmem_limit_bytes=vmem_limit,
        ),
    )(x2d, wd_t, wu_t)

    return out2d.reshape(*lead_shape, out_features)


def init_lora_params(key, in_features, out_features, r):
    """Deterministic init matching the PyTorch module's __init__."""
    # nn.init.kaiming_uniform_(lora_down.weight, a=sqrt(5)) -> bound = 1/sqrt(fan_in)
    bound = 1.0 / math.sqrt(in_features)
    w_down = jax.random.uniform(
        key, (r, in_features), dtype=jnp.float32, minval=-bound, maxval=bound)
    # nn.init.zeros_(lora_up.weight)
    w_up = jnp.zeros((out_features, r), dtype=jnp.float32)
    return w_down, w_up


def _reference(x2d, w_down, w_up, scaling):
    h = jnp.einsum("mk,rk->mr", x2d, w_down, precision=jax.lax.Precision.HIGHEST)
    y = jnp.einsum("mr,or->mo", h, w_up, precision=jax.lax.Precision.HIGHEST)
    return y * scaling


if __name__ == "__main__":
    key = jax.random.PRNGKey(0)
    k_x, k_wd, k_wu, k_x2, k_wd2, k_wu2 = jax.random.split(key, 6)

    # --- small module-like shapes: batch=2, seq=8, hidden=32, r=8, alpha=16 ---
    batch, seq, in_f, out_f, r, alpha = 2, 8, 32, 32, 8, 16
    scaling = alpha / r

    x = jax.random.normal(k_x, (batch, seq, in_f), dtype=jnp.float32)
    w_down, w_up_zero = init_lora_params(k_wd, in_f, out_f, r)
    w_up = jax.random.uniform(k_wu, (out_f, r), jnp.float32, minval=-0.1, maxval=0.1)

    ref = _reference(x.reshape(-1, in_f), w_down, w_up, scaling).reshape(
        batch, seq, out_f)

    # f32 compute path (unaligned in/out features exercised)
    out = jax.block_until_ready(lora_forward(x, w_down, w_up, alpha=alpha, r=r))
    assert out.shape == (batch, seq, out_f)
    assert jnp.allclose(out, ref, atol=1e-4, rtol=1e-4), "f32 mismatch vs reference"

    # zero-init lora_up (matches PyTorch __init__): output must be identically zero
    out0 = jax.block_until_ready(lora_forward(x, w_down, w_up_zero, alpha=alpha, r=r))
    assert jnp.allclose(out0, 0.0), "zero-init mismatch"

    # bf16 compute path (f32 MXU accumulation, f32 output) — valid on v5e/v6e/v7x
    out_bf16 = jax.block_until_ready(
        lora_forward(x, w_down, w_up, alpha=alpha, r=r, compute_dtype=jnp.bfloat16))
    assert jnp.allclose(out_bf16, ref, atol=5e-2, rtol=5e-2), "bf16 mismatch"

    # lane-aligned shapes (no wrapper padding/copies; >=2-step row grid)
    b2, s2, in2, out2 = 2, 24, 128, 256
    x2 = jax.random.normal(k_x2, (b2, s2, in2), dtype=jnp.float32)
    wd2 = jax.random.uniform(k_wd2, (r, in2), jnp.float32, minval=-0.2, maxval=0.2)
    wu2 = jax.random.uniform(k_wu2, (out2, r), jnp.float32, minval=-0.2, maxval=0.2)
    ref2 = _reference(x2.reshape(-1, in2), wd2, wu2, scaling).reshape(b2, s2, out2)
    out_aligned = jax.block_until_ready(lora_forward(x2, wd2, wu2, alpha=alpha, r=r))
    assert jnp.allclose(out_aligned, ref2, atol=1e-3, rtol=1e-3), "aligned mismatch"

    print("KERNEL_OK")
</pallas_src>

<mosaic_0001>
module attributes {stable_mosaic.version = 11 : i64} {
  func.func @_lora_kernel(%arg0: i32, %arg1: i32, %arg2: memref<8x32xf32, #tpu.memory_space<vmem>>, %arg3: memref<32x128xf32, #tpu.memory_space<vmem>>, %arg4: memref<128x32xf32, #tpu.memory_space<vmem>>, %arg5: memref<8x32xf32, #tpu.memory_space<vmem>>) attributes {dimension_semantics = [#tpu.dimension_semantics<parallel>, #tpu.dimension_semantics<parallel>], iteration_bounds = array<i64: 2, 1>, scalar_prefetch = 0 : i64, scratch_operands = 0 : i64, tpu.core_type = #tpu.core_type<tc>, window_params = [{transform_indices = @transform_0, window_bounds = array<i64: 8, 32>}, {pipeline_mode = #tpu.pipeline_mode<synchronous>, transform_indices = @transform_1, window_bounds = array<i64: 32, 128>}, {transform_indices = @transform_2, window_bounds = array<i64: 128, 32>}, {transform_indices = @transform_3, window_bounds = array<i64: 8, 32>}]} {
    %c0 = arith.constant 0 : index
    %c0_0 = arith.constant 0 : index
    %0 = vector.load %arg2[%c0, %c0_0] : memref<8x32xf32, #tpu.memory_space<vmem>>, vector<8x32xf32>
    %c0_1 = arith.constant 0 : index
    %c0_2 = arith.constant 0 : index
    %1 = vector.load %arg3[%c0_1, %c0_2] : memref<32x128xf32, #tpu.memory_space<vmem>>, vector<32x128xf32>
    %cst = arith.constant dense<0.000000e+00> : vector<8x128xf32>
    %2 = tpu.matmul %0, %1, %cst {dimension_numbers = #tpu.dot_dimension_numbers<[1], [0], [0], [1], [0, 0, 1, 1], [], []>} : vector<8x32xf32>, vector<32x128xf32>, vector<8x128xf32> -> vector<8x128xf32>
    %c0_3 = arith.constant 0 : index
    %c0_4 = arith.constant 0 : index
    %3 = vector.load %arg4[%c0_3, %c0_4] : memref<128x32xf32, #tpu.memory_space<vmem>>, vector<128x32xf32>
    %cst_5 = arith.constant dense<0.000000e+00> : vector<8x32xf32>
    %4 = tpu.matmul %2, %3, %cst_5 {dimension_numbers = #tpu.dot_dimension_numbers<[1], [0], [0], [1], [0, 0, 1, 1], [], []>} : vector<8x128xf32>, vector<128x32xf32>, vector<8x32xf32> -> vector<8x32xf32>
    %c0_6 = arith.constant 0 : index
    %c0_7 = arith.constant 0 : index
    %5 = vector.load %arg5[%c0_6, %c0_7] : memref<8x32xf32, #tpu.memory_space<vmem>>, vector<8x32xf32>
    tpu.vector_store %arg5[%c0_6, %c0_7], %4 {strides = array<i32>} : memref<8x32xf32, #tpu.memory_space<vmem>>, vector<8x32xf32>,
    return
  }
  func.func @transform_0(%arg0: i32, %arg1: i32) -> (i32, i32) {
    %c0_i32 = arith.constant 0 : i32
    %c0_i32_0 = arith.constant 0 : i32
    return %arg0, %c0_i32 : i32, i32
  }
  func.func @transform_1(%arg0: i32, %arg1: i32) -> (i32, i32) {
    %c0_i32 = arith.constant 0 : i32
    %c0_i32_0 = arith.constant 0 : i32
    %c0_i32_1 = arith.constant 0 : i32
    return %c0_i32, %c0_i32_0 : i32, i32
  }
  func.func @transform_2(%arg0: i32, %arg1: i32) -> (i32, i32) {
    %c0_i32 = arith.constant 0 : i32
    %c0_i32_0 = arith.constant 0 : i32
    return %c0_i32, %arg1 : i32, i32
  }
  func.func @transform_3(%arg0: i32, %arg1: i32) -> (i32, i32) {
    %c0_i32 = arith.constant 0 : i32
    return %arg0, %arg1 : i32, i32
  }
}

</mosaic_0001>

<bundles_post_ra>
// kernel: tpu_custom_call.1
= control target key start
LH: loop header
LB: loop body
LE: loop exit
PB: predicated region body
PF: predicated region fallthrough
CT: control target
= control target key end

     0   :  { %8 = vsyncpa [#allocation3], 0  ;;  %s908_s0 = inlined_call_operand.vmem [shape: f32[16,32], index: 0, kind: input, shape index: {}]   ;;  %s909_s1 = inlined_call_operand.vmem [shape: f32[32,128], index: 1, kind: input, shape index: {}]   ;;  %s910_s2 = inlined_call_operand.vmem [shape: f32[128,32], index: 2, kind: input, shape index: {}]   ;;  %s911_s3 = inlined_call_operand.hbm [shape: f32[16,32], index: 3, kind: output, shape index: {}]  }
   0x1   :  { %10 = vsyncpa [#allocation3 + $0x1], 0  ;;  %s734_s12 = smov 0   ;;  %s736_s13 = smov 0  }
   0x2   :  { %s738_s14 = smov 0   ;;  %s740_s15 = smov 0  }
   0x3   :  { %s742_s16 = smov 0   ;;  %s744_s17 = smov 0  }
   0x4 LB: > { %s461_s18 = sadd.s32 4294967295, %s708_s17   ;;  %s462_s19 = sadd.s32 4294967294, %s708_s17   ;;  %s708_s17 = sphi %s744_s17, %s16_s17   ;;  %s704_s16 = sphi %s742_s16, %s918_s16   ;;  %s700_s15 = sphi %s740_s15, %s917_s15   ;;  %s696_s14 = sphi %s738_s14, %s916_s14   ;;  %s692_s13 = sphi %s736_s13, %s915_s13   ;;  %s688_s12 = sphi %s734_s12, %s914_s12  }
   0x5   : > { %s28_s20 = sadd.s32 1, %s704_s16  ;;  %s110_s21 = sadd.s32 1, %s696_s14 }
   0x6   : > { %p30_p0 = scmp.ge.s32.totalorder %s28_s20, 2  ;;  %p120_p1 = scmp.ne.s32.totalorder %s696_s14, %s692_s13 }
   0x7   : > { %p121_p2 = scmp.eq.s32.totalorder %s461_s18, 1  ;;  %p126_p3 = scmp.ne.s32.totalorder %s692_s13, %s688_s12 }
   0x8   : > { %s920_s20 = smov (%p30_p0, %s28_s20), 0  ;;  %p127_p5 = scmp.eq.s32.totalorder %s462_s19, 1 }
   0x9   : > { %p774_p4 = por %p121_p2, %p120_p1  ;;  %s105_s23 = ssub.s32 %s704_s16, %s920_s20 }
   0xa   : > { %p466_p6 = scmp.ge.s32.totalorder %s708_s17, 1  ;;  %p108_p7 = scmp.eq.s32.totalorder %s105_s23, 0 }
   0xb   : > { %p781_p8 = por %p127_p5, %p126_p3  ;;  %p162_p9 = scmp.lt.s32.totalorder %s708_s17, 3 }
   0xc   : > { %s787_s25 = scalar_select %p108_p7, %s696_s14, %s110_s21  }
   0xd   : > { %p163_p10 = pnand %p466_p6, %p162_p9 }
   0xe   : > { %v198_v0 = vld [vmem:[%s909_s1] sm:$0xff] (!%p163_p10)  ;;  %v199_v1 = vld [vmem:[%s909_s1 + $0x8] sm:$0xff] (!%p163_p10)  ;;  %v200_v2 = vld [vmem:[%s909_s1 + $0x10] sm:$0xff] (!%p163_p10)  ;;  %v710_v3 = vmov (!%p163_p10), 0.0|0.0   ;;  %vm711_vm0 = vmmov (!%p163_p10), 0   ;;  %v712_v6 = vmov (!%p163_p10), 0.0  }
   0xf   : > { %166 = sbr.rel (%p163_p10) target bundleno = 465 (0x1d1), region = 32  ;;  %542 = vmatprep.subr.bf16.mxu0 (!%p163_p10), %v710_v3  ;;  %v543_v4 = vpack.c.bf16 (!%p163_p10), %v199_v1, %v198_v0  ;;  %v201_v5 = vld [vmem:[%s909_s1 + $0x18] sm:$0xff] (!%p163_p10)  ;;  %504 = vmatprep.mubr.msk.f32.mxu0 (!%p163_p10), %vm711_vm0, %v712_v6  ;;  %p189_p11 = scmp.lt.s32.totalorder (!%p163_p10), %s700_s15, 1  ;;  %v276_v7 = vld [vmem:[%s910_s2] sm:$0xff] (!%p163_p10)  ;;  %v277_v8 = vld [vmem:[%s910_s2 + $0x8] sm:$0xff] (!%p163_p10)  ;;  %vm202_vm1 = vcmask (!%p163_p10), 261120  }
  0x10   : > { %548 = vmatprep.subr.bf16.mxu1 (!%p163_p10), %v710_v3  ;;  %v549_v9 = vpack.c.bf16 (!%p163_p10), %v277_v8, %v276_v7  ;;  %v278_v10 = vld [vmem:[%s910_s2 + $0x10] sm:$0xff] (!%p163_p10)  ;;  %v279_v11 = vld [vmem:[%s910_s2 + $0x18] sm:$0xff] (!%p163_p10)  ;;  %539 = vmatprep.mubr.msk.f32.mxu1 (!%p163_p10), %vm711_vm0, %v712_v6  ;;  %v546_v12 = vpack.c.bf16 (!%p163_p10), %v201_v5, %v200_v2  ;;  %v280_v14 = vld [vmem:[%s910_s2 + $0x20] sm:$0xff] (!%p163_p10)  ;;  %s186_s10 = sand.u32 (!%p163_p10), 1, %s692_s13   ;;  %s471_s18 = sshll.u32 (!%p163_p10), %s700_s15, 7 }
  0x11   : > { %544 = vmatpush3.bf16.msra.mxu0 (!%p163_p10), %v543_v4  ;;  %v552_v13 = vpack.c.bf16 (!%p163_p10), %v279_v11, %v278_v10  ;;  %v281_v15 = vld [vmem:[%s910_s2 + $0x28] sm:$0xff] (!%p163_p10)  ;;  %v282_v18 = vld [vmem:[%s910_s2 + $0x30] sm:$0xff] (!%p163_p10)  ;;  %v283_v19 = vld [vmem:[%s910_s2 + $0x38] sm:$0xff] (!%p163_p10)  ;;  %s467_s11 = sshll.u32 (!%p163_p10), %s186_s10, 3  ;;  %s860_s27 = scalar_lea.hbm (!%p163_p10), %s911_s3, %s471_s18 }
  0x12   : > { %545 = vmatprep.subr.bf16.mxu0 (!%p163_p10), %v710_v3  ;;  %550 = vmatpush3.bf16.msra.mxu1 (!%p163_p10), %v549_v9  ;;  %v555_v17 = vpack.c.bf16 (!%p163_p10), %v281_v15, %v280_v14  ;;  %v558_v20 = vpack.c.bf16 (!%p163_p10), %v283_v19, %v282_v18  ;;  %v284_v21 = vld [vmem:[%s910_s2 + $0x40] sm:$0xff] (!%p163_p10)  ;;  %v285_v22 = vld [vmem:[%s910_s2 + $0x48] sm:$0xff] (!%p163_p10)  ;;  %v286_v24 = vld [vmem:[%s910_s2 + $0x50] sm:$0xff] (!%p163_p10)  ;;  %s188_s19 = scalar_lea.vmem (!%p163_p10), [#allocation2], %s467_s11  ;;  %s364_s28 = scalar_lea.sflag (!%p163_p10), [#allocation3], %s186_s10 }
  0x13   : > { %551 = vmatprep.subr.bf16.mxu1 (!%p163_p10), %v710_v3  ;;  %v561_v23 = vpack.c.bf16 (!%p163_p10), %v285_v22, %v284_v21  ;;  %v287_v25 = vld [vmem:[%s910_s2 + $0x58] sm:$0xff] (!%p163_p10)  ;;  %v288_v27 = vld [vmem:[%s910_s2 + $0x60] sm:$0xff] (!%p163_p10)  ;;  %v289_v28 = vld [vmem:[%s910_s2 + $0x68] sm:$0xff] (!%p163_p10)  ;;  %s378_s21 = sshll.u32 (!%p163_p10), %s188_s19, 4  ;;  %s862_s21 = int_to_ptr.vmem [resolvable:$true] %s378_s21 }
  0x14   : > { %v564_v26 = vpack.c.bf16 (!%p163_p10), %v287_v25, %v286_v24  ;;  %v567_v29 = vpack.c.bf16 (!%p163_p10), %v289_v28, %v288_v27  ;;  %v290_v30 = vld [vmem:[%s910_s2 + $0x70] sm:$0xff] (!%p163_p10)  ;;  %v291_v31 = vld [vmem:[%s910_s2 + $0x78] sm:$0xff] (!%p163_p10)  ;;  %s630_s29 = scalar_lea.vmem (!%p163_p10), %s862_s21, 128 }
  0x15   : > { %547 = vmatpush3.bf16.msra.mxu0 (!%p163_p10), %v546_v12  ;;  %v570_v32 = vpack.c.bf16 (!%p163_p10), %v291_v31, %v290_v30  ;;  %p631_p12 = scmp.ne.s32.totalorder (!%p163_p10), %s862_s21, %s630_s29 }
  0x16   : > { %s190_s23 = scalar_select %p189_p11, %s700_s15, 1  ;;  %553 = vmatpush3.bf16.msra.mxu1 %v552_v13 }
  0x17   : > { %554 = vmatprep.subr.bf16.mxu1 %v710_v3  ;;  %p632_p13 = pnand %p631_p12, %p774_p4  ;;  %s713_s15 = smov [#allocation2]  }
  0x18   : > { %s468_s26 = sshll.u32 %s190_s23, 3  ;;  %s634_s30 = sshll.u32 %s713_s15, 4  ;;  %s635_s30 = int_to_ptr.vmem [resolvable:$false] %s634_s30 }
  0x19   : > { %s192_s6 = scalar_lea.vmem %s908_s0, %s468_s26  ;;  %p633_p0 = pneg %p632_p13 }
  0x1a   : > { %v197_v16 = vld [vmem:[%s192_s6] sm:$0xff]  ;;  %556 = vmatpush3.bf16.msra.mxu1 %v555_v17  ;;  %s636_s4 = scalar_lea.vmem %s635_s30, 256  ;;  %p637_p1 = scmp.lt.s32.totalorder %s862_s21, %s635_s30 }
  0x1b   : > { %505 = vmatmul.mubr.msk.f32.vlgmr.msra.gmra.mrb[0].mxu0 %vm202_vm1, %v197_v16  ;;  %557 = vmatprep.subr.bf16.mxu1 %v710_v3  ;;  %p638_p2 = scmp.lt.s32.totalorder %s636_s4, %s630_s29 }
  0x1d   : > { %p639_p3 = por %p638_p2, %p637_p1 }
  0x1e   : > { %559 = vmatpush3.bf16.msra.mxu1 %v558_v20 }
  0x1f   : > { %560 = vmatprep.subr.bf16.mxu1 %v710_v3  ;;  %p640_p5 = pnand %p639_p3, %p633_p0 }
  0x22   : > { %562 = vmatpush3.bf16.msra.mxu1 %v561_v23 }
  0x23   : > { %563 = vmatprep.subr.bf16.mxu1 %v710_v3 }
  0x26   : > { %565 = vmatpush3.bf16.msra.mxu1 %v564_v26 }
  0x27   : > { %566 = vmatprep.subr.bf16.mxu1 %v710_v3 }
  0x2a   : > { %568 = vmatpush3.bf16.msra.mxu1 %v567_v29 }
  0x2b   : > { %569 = vmatprep.subr.bf16.mxu1 %v710_v3 }
  0x2e   : > { %571 = vmatpush3.bf16.msra.mxu1 %v570_v32 }
  0xee   : > { %v272_v33 = vpop.f32.mrb[0].mxu0 }
  0xef   : > { %v506_v34 = vpop.f32.mrb[1].mxu0  ;;  %540 = vmatmul.mubr.f32.vlgmr.msra.gmra.mrb[0].mxu1 %v272_v33 }
 0x1c2   : > { %v358_v35 = vpop.f32.mrb[0].mxu1 }
 0x1c3   : > { %362 = vst.msk [vmem:[%s188_s19] sm:$0xff] %vm202_vm1, %v358_v35  ;;  %v541_v36 = vpop.f32.mrb[1].mxu1 }
 0x1c4   : > { %643 = shalt.err (!%p640_p5)
}
 0x1c5   : > { %s644_s5 = scalar_lea.hbm %s860_s27, 128  ;;  %s648_s8 = scalar_lea.hbm %s911_s3, 256 }
 0x1c6   : > { %p645_p6 = scmp.ne.s32.totalorder %s860_s27, %s644_s5  ;;  %p649_p10 = scmp.lt.u32.totalorder %s860_s27, %s911_s3 }
 0x1c7   : > { %p650_p11 = scmp.lt.u32.totalorder %s648_s8, %s644_s5  ;;  %p652_p13 = scmp.lt.u32.totalorder %s644_s5, %s860_s27 }
 0x1c8   : > { %p646_p7 = pnand %p645_p6, %p774_p4 }
 0x1c9   : > { %p651_p12 = por %p650_p11, %p649_p10 }
 0x1ca   : > { %p647_p9 = pneg %p646_p7 }
 0x1cb   : > { %p653_p0 = por %p652_p13, %p651_p12 }
 0x1cd   : > { %p654_p1 = pnand %p653_p0, %p647_p9 }
 0x1cf   : > { %657 = shalt.err (!%p654_p1)
}
 0x1d0   : > { %572 = dma.vmem_to_hbm [thread:$0]  (%p774_p4), %s862_s21, 128, %s860_s27, %s364_s28  }
 0x1d1 PF: > { %p578_p2 = scmp.ge.s32.totalorder %s708_s17, 2  ;;  %s390_s11 = sand.u32 1, %s688_s12  }
 0x1d2   : > { %s391_s18 = scalar_lea.sflag [#allocation3], %s390_s11 }
 0x1d3   : > { %p575_p3 = pnand %p578_p2, %p781_p8 }
 0x1d5   : > { %683 = dma.done.wait (!%p575_p3), %s391_s18, 128  }
 0x1d6   : > { %685 = vsyncadd (!%p575_p3), %s391_s18, 4294967168  ;;  %s16_s17 = sadd.s32 1, %s708_s17   ;;  %s914_s12 = smov %s692_s13 }
 0x1d7   : > { %p13_p5 = scmp.ge.s32.totalorder %s16_s17, 4   ;;  %s915_s13 = smov %s696_s14 }
 0x1d8   : > { %s916_s14 = smov %s787_s25  ;;  %s917_s15 = smov %s704_s16 }
 0x1d9   : > { %s918_s16 = smov %s920_s20  ;;  %15 = sbr.rel (!%p13_p5) target bundleno = 4 (0x4), region = 70 }
 0x1e0   :  { %396 = vsyncpa [#allocation3], 1 }
 0x1e1   :  { %398 = vsyncpa [#allocation3 + $0x1], 1 }

</bundles_post_ra>
